<compile_context>
chip_gen: v7x
topology: tpu7x:2x2x1
jax: 0.10.0
libtpu: 0.0.40
codegen_flags: <defaults>
</compile_context>

<pallas_src>
import functools

import jax
import jax.numpy as jnp
from jax.experimental import pallas as pl
from jax.experimental.pallas import tpu as pltpu


def _round_up(x, m):
    return ((x + m - 1) // m) * m


# ---------------------------------------------------------------------------
# Trace-time hardware queries (fully guarded so they can never break tracing).
# ---------------------------------------------------------------------------
def _device_kind():
    try:
        return jax.devices()[0].device_kind.lower()
    except Exception:
        return ""


def _vmem_capacity_bytes():
    try:
        cap = int(getattr(pltpu.get_tpu_info(), "vmem_capacity_bytes", 0))
        if cap > 0:
            return cap
    except Exception:
        pass
    kind = _device_kind()
    if "v7" in kind or "7x" in kind:
        return 64 << 20          # v7x: 64 MiB per TensorCore
    return 128 << 20             # v5e / v6e: 128 MiB


def _num_tensorcores_per_chip():
    kind = _device_kind()
    return 2 if ("v7" in kind or "7x" in kind) else 1


_SINGLE_BUFFER_OK = None


def _single_buffer_ok():
    """True iff this JAX supports pipeline_mode=pl.Buffered(1) on a BlockSpec."""
    global _SINGLE_BUFFER_OK
    if _SINGLE_BUFFER_OK is None:
        ok = False
        if hasattr(pl, "Buffered"):
            try:
                pl.BlockSpec((8, 128), lambda *_: (0, 0),
                             pipeline_mode=pl.Buffered(1))
                ok = True
            except Exception:
                ok = False
        _SINGLE_BUFFER_OK = ok
    return _SINGLE_BUFFER_OK


def _resident_spec(shape):
    """BlockSpec for an operand whose block index never changes.

    Double-buffering a constant-index block is pure VMEM waste, so request a
    single buffer; falls back to the default spec on older JAX versions (the
    VMEM accounting in mlpj_forward matches whichever path is taken).
    """
    zero = (0,) * len(shape)
    index_map = lambda *_: zero
    if _single_buffer_ok():
        return pl.BlockSpec(shape, index_map, pipeline_mode=pl.Buffered(1))
    return pl.BlockSpec(shape, index_map)


# ---------------------------------------------------------------------------
# Kernels
# ---------------------------------------------------------------------------
def _mlpj_fused_kernel(x_ref, w1_ref, b1_ref, w2_ref, b2_ref, o_ref):
    # lin1: (tm, in) @ (in, hid) + (1, hid), relu in f32 on the VPU
    x = x_ref[...].astype(w1_ref.dtype)
    h = jnp.dot(x, w1_ref[...], preferred_element_type=jnp.float32)
    h = jnp.maximum(h + b1_ref[...].astype(jnp.float32), 0.0)
    # lin2: (tm, hid) @ (hid, out) + (1, out)
    o = jnp.dot(h.astype(w2_ref.dtype), w2_ref[...],
                preferred_element_type=jnp.float32)
    o_ref[...] = (o + b2_ref[...].astype(jnp.float32)).astype(o_ref.dtype)


def _mlpj_split_kernel(x_ref, w1_ref, b1_ref, w2_ref, b2_ref, o_ref, acc_ref):
    # Hidden-dim reduction: grid = (rows, hidden // tk).  Each step computes a
    # tk-wide slice of relu(x@W1+b1) and its contribution to the output via the
    # matching tk rows of W2, accumulated in f32 (relu is elementwise, so the
    # split over the hidden dim is exact).
    j = pl.program_id(1)

    @pl.when(j == 0)
    def _():
        acc_ref[...] = jnp.zeros_like(acc_ref)

    x = x_ref[...].astype(w1_ref.dtype)
    h = jnp.dot(x, w1_ref[...], preferred_element_type=jnp.float32)
    h = jnp.maximum(h + b1_ref[...].astype(jnp.float32), 0.0)
    acc_ref[...] += jnp.dot(h.astype(w2_ref.dtype), w2_ref[...],
                            preferred_element_type=jnp.float32)

    @pl.when(j == pl.num_programs(1) - 1)
    def _():
        o_ref[...] = (acc_ref[...]
                      + b2_ref[...].astype(jnp.float32)).astype(o_ref.dtype)


# ---------------------------------------------------------------------------
# One-time weight preparation (call once, reuse across forward calls).
# ---------------------------------------------------------------------------
def prepare_mlpj_params(w1, b1, w2, b2, *, compute_dtype=None):
    """Hoists all weight reshaping/padding out of the per-call jitted path.

    * biases are reshaped to (1, features) so they broadcast on the lane axis
    * the hidden/output feature dim is zero-padded to a multiple of 128 only
      when the padding overhead is <= 50% (lane-dense stores without output
      write amplification for tiny out_feat)
    * optionally casts W1/W2 to `compute_dtype` (e.g. bf16) for ~3x MXU
      throughput in the compute-bound regime; biases stay f32.
    Returns (w1, b1, w2, b2, out_feat) with out_feat = ORIGINAL output width.
    """
    in_feat, out_feat = w1.shape
    b1 = b1.reshape(1, -1)
    b2 = b2.reshape(1, -1)
    out_pad = _round_up(out_feat, 128)
    if out_pad != out_feat and 2 * out_pad <= 3 * out_feat:  # overhead <= 50%
        pad = out_pad - out_feat
        w1 = jnp.pad(w1, ((0, 0), (0, pad)))
        b1 = jnp.pad(b1, ((0, 0), (0, pad)))
        w2 = jnp.pad(w2, ((0, pad), (0, pad)))
        b2 = jnp.pad(b2, ((0, 0), (0, pad)))
    if compute_dtype is not None:
        w1 = w1.astype(compute_dtype)
        w2 = w2.astype(compute_dtype)
    # NOTE: padding in_feat (K) is deliberately skipped — it would force a
    # per-call pad of x in HBM; x blocks use the full K dim so they stay legal.
    return w1, b1, w2, b2, out_feat


# ---------------------------------------------------------------------------
# Forward
# ---------------------------------------------------------------------------
@functools.partial(jax.jit,
                   static_argnames=("out_feat", "row_tile", "hidden_chunk"))
def mlpj_forward(x, w1, b1, w2, b2, *, out_feat=None, row_tile=512,
                 hidden_chunk=None):
    """Pallas TPU implementation of MLPJ.forward.

    x  : (N, in_feat)
    w1 : (in_feat, hidden)   (== torch lin1.weight.T, possibly lane-padded)
    b1 : (1, hidden)
    w2 : (hidden, out_dim)   (== torch lin2.weight.T, possibly lane-padded)
    b2 : (1, out_dim)
    out_feat : original (unpadded) output width; defaults to w2.shape[1]
    hidden_chunk : force the hidden-dim reduction path with this chunk size
                   (must divide hidden and be a multiple of 128)
    """
    n, in_feat = x.shape
    hidden = w1.shape[1]
    out_dim = w2.shape[1]
    if out_feat is None:
        out_feat = out_dim

    x_it = jnp.dtype(x.dtype).itemsize
    w_it = jnp.dtype(w1.dtype).itemsize
    o_it = x_it

    resident_bufs = 1 if _single_buffer_ok() else 2

    # ---- per-generation VMEM budget (explicitly handed to Mosaic below) -----
    cap = _vmem_capacity_bytes()
    budget = min((cap * 5) // 8, 96 << 20)   # ~80 MiB v5e/v6e, ~40 MiB v7x
    headroom = 2 << 20                       # compiler internal scratch, etc.
    ncores = _num_tensorcores_per_chip()

    def weight_bytes(tk):
        if tk == hidden:   # fused: every weight resident at a constant index
            return resident_bufs * (in_feat * hidden + hidden * out_dim
                                    + hidden + out_dim) * w_it
        # split: W1/b1/W2 chunks stream (double-buffered), b2 stays resident
        return (2 * (in_feat * tk + tk * out_dim + tk) * w_it
                + resident_bufs * out_dim * w_it)

    def per_row_bytes(tk, split):
        b = 2 * in_feat * x_it          # x tile (double-buffered)
        b += 2 * out_dim * o_it         # out tile (double-buffered)
        b += tk * 4 + tk * w_it         # f32 h chunk + cast copy for matmul #2
        b += out_dim * 4                # f32 matmul #2 result
        if split:
            b += out_dim * 4            # f32 accumulator scratch
        return b

    # ---- fused (weight-resident) vs hidden-reduction split ------------------
    use_split = False
    tk = hidden
    if hidden_chunk is not None and hidden_chunk < hidden:
        if hidden % hidden_chunk or hidden_chunk % 128:
            raise ValueError("hidden_chunk must divide the (padded) hidden dim "
                             "and be a multiple of 128")
        use_split, tk = True, hidden_chunk
    elif (weight_bytes(hidden) + 8 * per_row_bytes(hidden, False) + headroom
          > budget) and hidden % 128 == 0:
        # Weights no longer fit VMEM-resident (typically v7x, 64 MiB VMEM):
        # stream W1 columns / W2 rows over a trailing "arbitrary" axis.
        use_split = True
        nblk = hidden // 128
        tk = 128
        for k_steps in range(2, nblk + 1):
            if nblk % k_steps:
                continue
            cand = hidden // k_steps
            if (weight_bytes(cand) + 8 * per_row_bytes(cand, True) + headroom
                    <= budget):
                tk = cand
                break

    wbytes = weight_bytes(tk)
    prow = per_row_bytes(tk, use_split)
    avail = max(budget - headroom - wbytes, 8 * prow)
    tm_cap = max(8, (avail // prow) // 8 * 8)
    tm = max(8, _round_up(min(row_tile, n), 8))
    tm = min(tm, tm_cap)

    # ---- v7x megacore: even, load-balanced row steps; skipped on 1-TC chips -
    if ncores >= 2 and n > 16:
        steps = pl.cdiv(n, tm)
        steps = max(2, steps + (steps % 2))
        tm = min(tm, max(8, _round_up(pl.cdiv(n, steps), 8)))
    rows = pl.cdiv(n, tm)

    # ---- advisory cost + explicit VMEM limit ---------------------------------
    weight_elems = in_feat * hidden + hidden * out_dim + hidden + out_dim
    weight_reads = rows if use_split else 1
    cost = pl.CostEstimate(
        flops=2 * n * hidden * (in_feat + out_dim),
        transcendentals=0,
        bytes_accessed=(n * in_feat * x_it + n * out_dim * o_it
                        + weight_reads * weight_elems * w_it))
    vmem_limit = int(min(max(budget, wbytes + 8 * prow + headroom),
                         (cap * 7) // 8))

    if not use_split:
        kernel = _mlpj_fused_kernel
        grid = (rows,)
        in_specs = [
            pl.BlockSpec((tm, in_feat), lambda i: (i, 0)),   # x tile
            _resident_spec((in_feat, hidden)),               # W1
            _resident_spec((1, hidden)),                     # b1
            _resident_spec((hidden, out_dim)),               # W2
            _resident_spec((1, out_dim)),                    # b2
        ]
        out_specs = pl.BlockSpec((tm, out_dim), lambda i: (i, 0))
        scratch_shapes = ()
        dims = ("parallel",)
    else:
        kernel = _mlpj_split_kernel
        grid = (rows, hidden // tk)
        in_specs = [
            pl.BlockSpec((tm, in_feat), lambda i, j: (i, 0)),  # x tile
            pl.BlockSpec((in_feat, tk), lambda i, j: (0, j)),  # W1 chunk
            pl.BlockSpec((1, tk), lambda i, j: (0, j)),        # b1 chunk
            pl.BlockSpec((tk, out_dim), lambda i, j: (j, 0)),  # W2 chunk
            _resident_spec((1, out_dim)),                      # b2
        ]
        out_specs = pl.BlockSpec((tm, out_dim), lambda i, j: (i, 0))
        scratch_shapes = (pltpu.VMEM((tm, out_dim), jnp.float32),)
        dims = ("parallel", "arbitrary")

    out = pl.pallas_call(
        kernel,
        out_shape=jax.ShapeDtypeStruct((n, out_dim), x.dtype),
        grid_spec=pltpu.PrefetchScalarGridSpec(
            num_scalar_prefetch=0,
            grid=grid,
            in_specs=in_specs,
            out_specs=out_specs,
            scratch_shapes=scratch_shapes,
        ),
        compiler_params=pltpu.CompilerParams(
            dimension_semantics=dims,
            vmem_limit_bytes=vmem_limit),
        cost_estimate=cost,
    )(x, w1, b1, w2, b2)

    return out[:, :out_feat] if out_feat != out_dim else out


# ---------------------------------------------------------------------------
# Init + reference
# ---------------------------------------------------------------------------
def init_mlpj_params(key, in_feat, out_feat, dtype=jnp.float32):
    """Deterministic init mimicking torch.nn.Linear (uniform +/- 1/sqrt(fan_in)).

    Weights are stored pre-transposed as (in, out) so the kernel does x @ W.
    """
    k1, k2, k3, k4 = jax.random.split(key, 4)
    bound1 = 1.0 / jnp.sqrt(in_feat)
    bound2 = 1.0 / jnp.sqrt(out_feat)
    w1 = jax.random.uniform(k1, (in_feat, out_feat), dtype, -bound1, bound1)
    b1 = jax.random.uniform(k2, (1, out_feat), dtype, -bound1, bound1)
    w2 = jax.random.uniform(k3, (out_feat, out_feat), dtype, -bound2, bound2)
    b2 = jax.random.uniform(k4, (1, out_feat), dtype, -bound2, bound2)
    return w1, b1, w2, b2


def mlpj_reference(x, w1, b1, w2, b2):
    h = jnp.maximum(x @ w1 + b1, 0.0)
    return h @ w2 + b2


if __name__ == "__main__":
    key = jax.random.PRNGKey(0)
    kx1, kx2, kx3, kp1, kp2 = jax.random.split(key, 5)

    # ---- Case 1/2: in_feat=out_feat=32 — fused, unpadded (masked vst) path --
    in_feat, out_feat = 32, 32
    raw = init_mlpj_params(kp1, in_feat, out_feat)
    w1, b1, w2, b2, of = prepare_mlpj_params(*raw)   # one-time weight prep

    x_small = jax.random.normal(kx1, (8, in_feat), jnp.float32)
    out_small = jax.block_until_ready(
        mlpj_forward(x_small, w1, b1, w2, b2, out_feat=of))
    ref_small = mlpj_reference(x_small, *raw)
    assert out_small.shape == (8, out_feat)
    assert jnp.allclose(out_small, ref_small, atol=1e-5, rtol=1e-5)

    x_big = jax.random.normal(kx2, (300, in_feat), jnp.float32)
    out_big = jax.block_until_ready(
        mlpj_forward(x_big, w1, b1, w2, b2, out_feat=of))
    ref_big = mlpj_reference(x_big, *raw)
    assert out_big.shape == (300, out_feat)
    assert jnp.allclose(out_big, ref_big, atol=1e-5, rtol=1e-5)

    # ---- Case 3: exercise the hidden-reduction fallback (v7x large-weight) --
    in_feat3, out_feat3 = 64, 256
    raw3 = init_mlpj_params(kp2, in_feat3, out_feat3)
    w13, b13, w23, b23, of3 = prepare_mlpj_params(*raw3)
    x3 = jax.random.normal(kx3, (96, in_feat3), jnp.float32)
    out3 = jax.block_until_ready(
        mlpj_forward(x3, w13, b13, w23, b23, out_feat=of3, hidden_chunk=128))
    ref3 = mlpj_reference(x3, *raw3)
    assert out3.shape == (96, out_feat3)
    assert jnp.allclose(out3, ref3, atol=1e-4, rtol=1e-4)

    print("KERNEL_OK")
</pallas_src>

<mosaic_0001>
module attributes {stable_mosaic.version = 11 : i64} {
  func.func @_mlpj_fused_kernel(%arg0: i32, %arg1: memref<8x32xf32, #tpu.memory_space<vmem>>, %arg2: memref<32x32xf32, #tpu.memory_space<vmem>>, %arg3: memref<1x32xf32, #tpu.memory_space<vmem>>, %arg4: memref<32x32xf32, #tpu.memory_space<vmem>>, %arg5: memref<1x32xf32, #tpu.memory_space<vmem>>, %arg6: memref<8x32xf32, #tpu.memory_space<vmem>>) attributes {dimension_semantics = [#tpu.dimension_semantics<parallel>], iteration_bounds = array<i64: 1>, scalar_prefetch = 0 : i64, scratch_operands = 0 : i64, tpu.core_type = #tpu.core_type<tc>, window_params = [{transform_indices = @transform_0, window_bounds = array<i64: 8, 32>}, {pipeline_mode = #tpu.pipeline_mode<synchronous>, transform_indices = @transform_1, window_bounds = array<i64: 32, 32>}, {pipeline_mode = #tpu.pipeline_mode<synchronous>, transform_indices = @transform_2, window_bounds = array<i64: 1, 32>}, {pipeline_mode = #tpu.pipeline_mode<synchronous>, transform_indices = @transform_3, window_bounds = array<i64: 32, 32>}, {pipeline_mode = #tpu.pipeline_mode<synchronous>, transform_indices = @transform_4, window_bounds = array<i64: 1, 32>}, {transform_indices = @transform_5, window_bounds = array<i64: 8, 32>}]} {
    %c0 = arith.constant 0 : index
    %c0_0 = arith.constant 0 : index
    %0 = vector.load %arg1[%c0, %c0_0] : memref<8x32xf32, #tpu.memory_space<vmem>>, vector<8x32xf32>
    %c0_1 = arith.constant 0 : index
    %c0_2 = arith.constant 0 : index
    %1 = vector.load %arg2[%c0_1, %c0_2] : memref<32x32xf32, #tpu.memory_space<vmem>>, vector<32x32xf32>
    %cst = arith.constant dense<0.000000e+00> : vector<8x32xf32>
    %2 = tpu.matmul %0, %1, %cst {dimension_numbers = #tpu.dot_dimension_numbers<[1], [0], [0], [1], [0, 0, 1, 1], [], []>} : vector<8x32xf32>, vector<32x32xf32>, vector<8x32xf32> -> vector<8x32xf32>
    %c0_3 = arith.constant 0 : index
    %c0_4 = arith.constant 0 : index
    %3 = vector.load %arg3[%c0_3, %c0_4] : memref<1x32xf32, #tpu.memory_space<vmem>>, vector<1x32xf32>
    %4 = vector.broadcast %3 : vector<1x32xf32> to vector<8x32xf32>
    %5 = arith.addf %2, %4 : vector<8x32xf32>
    %cst_5 = arith.constant 0.000000e+00 : f32
    %6 = vector.broadcast %cst_5 : f32 to vector<8x32xf32>
    %7 = arith.maximumf %5, %6 : vector<8x32xf32>
    %c0_6 = arith.constant 0 : index
    %c0_7 = arith.constant 0 : index
    %8 = vector.load %arg4[%c0_6, %c0_7] : memref<32x32xf32, #tpu.memory_space<vmem>>, vector<32x32xf32>
    %cst_8 = arith.constant dense<0.000000e+00> : vector<8x32xf32>
    %9 = tpu.matmul %7, %8, %cst_8 {dimension_numbers = #tpu.dot_dimension_numbers<[1], [0], [0], [1], [0, 0, 1, 1], [], []>} : vector<8x32xf32>, vector<32x32xf32>, vector<8x32xf32> -> vector<8x32xf32>
    %c0_9 = arith.constant 0 : index
    %c0_10 = arith.constant 0 : index
    %10 = vector.load %arg5[%c0_9, %c0_10] : memref<1x32xf32, #tpu.memory_space<vmem>>, vector<1x32xf32>
    %11 = vector.broadcast %10 : vector<1x32xf32> to vector<8x32xf32>
    %12 = arith.addf %9, %11 : vector<8x32xf32>
    %c0_11 = arith.constant 0 : index
    %c0_12 = arith.constant 0 : index
    %13 = vector.load %arg6[%c0_11, %c0_12] : memref<8x32xf32, #tpu.memory_space<vmem>>, vector<8x32xf32>
    tpu.vector_store %arg6[%c0_11, %c0_12], %12 {strides = array<i32>} : memref<8x32xf32, #tpu.memory_space<vmem>>, vector<8x32xf32>,
    return
  }
  func.func @transform_0(%arg0: i32) -> (i32, i32) {
    %c0_i32 = arith.constant 0 : i32
    %c0_i32_0 = arith.constant 0 : i32
    return %arg0, %c0_i32 : i32, i32
  }
  func.func @transform_1(%arg0: i32) -> (i32, i32) {
    %c0_i32 = arith.constant 0 : i32
    %c0_i32_0 = arith.constant 0 : i32
    %c0_i32_1 = arith.constant 0 : i32
    return %c0_i32, %c0_i32_0 : i32, i32
  }
  func.func @transform_2(%arg0: i32) -> (i32, i32) {
    %c0_i32 = arith.constant 0 : i32
    %c0_i32_0 = arith.constant 0 : i32
    %c0_i32_1 = arith.constant 0 : i32
    return %c0_i32, %c0_i32_0 : i32, i32
  }
  func.func @transform_3(%arg0: i32) -> (i32, i32) {
    %c0_i32 = arith.constant 0 : i32
    %c0_i32_0 = arith.constant 0 : i32
    %c0_i32_1 = arith.constant 0 : i32
    return %c0_i32, %c0_i32_0 : i32, i32
  }
  func.func @transform_4(%arg0: i32) -> (i32, i32) {
    %c0_i32 = arith.constant 0 : i32
    %c0_i32_0 = arith.constant 0 : i32
    %c0_i32_1 = arith.constant 0 : i32
    return %c0_i32, %c0_i32_0 : i32, i32
  }
  func.func @transform_5(%arg0: i32) -> (i32, i32) {
    %c0_i32 = arith.constant 0 : i32
    %c0_i32_0 = arith.constant 0 : i32
    return %arg0, %c0_i32 : i32, i32
  }
}

</mosaic_0001>

<bundles_post_ra>
// kernel: mlpj_forward.1
= control target key start
LH: loop header
LB: loop body
LE: loop exit
PB: predicated region body
PF: predicated region fallthrough
CT: control target
= control target key end

     0   :  { %10 = vsyncpa [#allocation3], 0  ;;  %s587_s0 = inlined_call_operand.hbm [shape: f32[8,32], index: 0, kind: input, shape index: {}]   ;;  %s588_s1 = inlined_call_operand.hbm [shape: f32[32,32], index: 1, kind: input, shape index: {}]   ;;  %s589_s2 = inlined_call_operand.hbm [shape: f32[1,32], index: 2, kind: input, shape index: {}]   ;;  %s590_s3 = inlined_call_operand.hbm [shape: f32[32,32], index: 3, kind: input, shape index: {}]   ;;  %s591_s4 = inlined_call_operand.hbm [shape: f32[1,32], index: 4, kind: input, shape index: {}]   ;;  %s592_s5 = inlined_call_operand.hbm [shape: f32[8,32], index: 5, kind: output, shape index: {}]  }
   0x1   :  { %11 = vsyncpa [#allocation6], 0 }
   0x2   :  { %12 = vsyncpa [#allocation9], 0 }
   0x3   :  { %13 = vsyncpa [#allocation4], 0  ;;  %s471_s18 = smov [#allocation5]   ;;  %s331_s22 = scalar_lea.hbm %s588_s1, 512 }
   0x4   :  { %s29_s19 = sshll.u32 %s471_s18, 4  ;;  %p332_p0 = scmp.ne.s32.totalorder %s588_s1, %s331_s22  ;;  %s30_s19 = int_to_ptr.vmem [resolvable:$true] %s29_s19 }
   0x5   :  { %p335_p1 = scmp.lt.u32.totalorder %s331_s22, %s588_s1 }
   0x7   :  { %p337_p2 = pnand %p335_p1, %p332_p0 }
   0x9   :  { %340 = shalt.err (!%p337_p2)
}
   0xa   :  { %s341_s27 = scalar_lea.vmem %s30_s19, 512  ;;  %p346_p4 = scmp.lt.s32.totalorder %s30_s19, %s30_s19 }
   0xb   :  { %p342_p3 = scmp.ne.s32.totalorder %s30_s19, %s341_s27  ;;  %p347_p5 = scmp.lt.s32.totalorder %s341_s27, %s341_s27 }
   0xd   :  { %p348_p6 = por %p347_p5, %p346_p4 }
   0xf   :  { %p349_p7 = pnand %p348_p6, %p342_p3 }
  0x11   :  { %352 = shalt.err (!%p349_p7)
}
  0x12   :  { %s472_s28 = smov 128   ;;  %s473_s29 = smov 8  }
  0x13   :  { %35 = dma.hbm_to_vmem [thread:$0]  %s588_s1, 512, %s30_s19, [#allocation6], %s472_s28, %s472_s28, %s473_s29  }
  0x14   :  { %s474_s7 = smov [#allocation8]   ;;  %s475_s9 = smov [#allocation2]  }
  0x15   :  { %s51_s8 = sshll.u32 %s474_s7, 4  ;;  %s20_s10 = sshll.u32 %s475_s9, 4  ;;  %s52_s8 = int_to_ptr.vmem [resolvable:$true] %s51_s8  ;;  %s21_s10 = int_to_ptr.vmem [resolvable:$true] %s20_s10 }
  0x16   :  { %s353_s13 = scalar_lea.hbm %s590_s3, 512 }
  0x17   :  { %p354_p8 = scmp.ne.s32.totalorder %s590_s3, %s353_s13  ;;  %p357_p9 = scmp.lt.u32.totalorder %s353_s13, %s590_s3 }
  0x19   :  { %p359_p10 = pnand %p357_p9, %p354_p8 }
  0x1b   :  { %362 = shalt.err (!%p359_p10)
}
  0x1c   :  { %s363_s1 = scalar_lea.vmem %s52_s8, 512  ;;  %p368_p12 = scmp.lt.s32.totalorder %s52_s8, %s52_s8 }
  0x1d   :  { %p364_p11 = scmp.ne.s32.totalorder %s52_s8, %s363_s1  ;;  %p369_p13 = scmp.lt.s32.totalorder %s363_s1, %s363_s1 }
  0x1f   :  { %p370_p0 = por %p369_p13, %p368_p12 }
  0x21   :  { %p371_p1 = pnand %p370_p0, %p364_p11 }
  0x23   :  { %374 = shalt.err (!%p371_p1)
}
  0x24   :  { %57 = dma.hbm_to_vmem [thread:$0]  %s590_s3, 512, %s52_s8, [#allocation9], %s472_s28, %s472_s28, %s473_s29  }
  0x25   :  { %s375_s22 = scalar_lea.hbm %s587_s0, 128 }
  0x26   :  { %p376_p2 = scmp.ne.s32.totalorder %s587_s0, %s375_s22  ;;  %p379_p3 = scmp.lt.u32.totalorder %s375_s22, %s587_s0 }
  0x28   :  { %p381_p4 = pnand %p379_p3, %p376_p2 }
  0x2a   :  { %384 = shalt.err (!%p381_p4)
}
  0x2b   :  { %s385_s27 = scalar_lea.vmem %s21_s10, 128  ;;  %p390_p6 = scmp.lt.s32.totalorder %s21_s10, %s21_s10 }
  0x2c   :  { %p386_p5 = scmp.ne.s32.totalorder %s21_s10, %s385_s27  ;;  %p391_p7 = scmp.lt.s32.totalorder %s385_s27, %s385_s27 }
  0x2e   :  { %p392_p8 = por %p391_p7, %p390_p6 }
  0x30   :  { %p393_p9 = pnand %p392_p8, %p386_p5 }
  0x32   :  { %396 = shalt.err (!%p393_p9)
}
  0x33   :  { %23 = dma.hbm_to_vmem [thread:$0]  %s587_s0, 128, %s21_s10, [#allocation3]  }
  0x34   :  { %s476_s29 = smov [#allocation7]   ;;  %s477_s6 = smov [#allocation10]  }
  0x35   :  { %s42_s30 = sshll.u32 %s476_s29, 4  ;;  %s64_s7 = sshll.u32 %s477_s6, 4  ;;  %s43_s30 = int_to_ptr.vmem [resolvable:$true] %s42_s30  ;;  %s65_s7 = int_to_ptr.vmem [resolvable:$true] %s64_s7 }
  0x36   :  { %s397_s11 = scalar_lea.hbm %s589_s2, 16 }
  0x37   :  { %p398_p10 = scmp.ne.s32.totalorder %s589_s2, %s397_s11  ;;  %p401_p11 = scmp.lt.u32.totalorder %s397_s11, %s589_s2 }
  0x39   :  { %p403_p12 = pnand %p401_p11, %p398_p10 }
  0x3b   :  { %406 = shalt.err (!%p403_p12)
}
  0x3c   :  { %s407_s0 = scalar_lea.vmem %s43_s30, 16  ;;  %s411_s10 = scalar_lea.vmem %s43_s30, 32 }
  0x3d   :  { %p408_p13 = scmp.ne.s32.totalorder %s43_s30, %s407_s0  ;;  %p412_p0 = scmp.lt.s32.totalorder %s43_s30, %s43_s30 }
  0x3e   :  { %p413_p1 = scmp.lt.s32.totalorder %s411_s10, %s407_s0 }
  0x40   :  { %p414_p2 = por %p413_p1, %p412_p0 }
  0x42   :  { %p415_p3 = pnand %p414_p2, %p408_p13 }
  0x44   :  { %418 = shalt.err (!%p415_p3)
}
  0x45   :  { %45 = dma.hbm_to_vmem [thread:$0]  %s589_s2, 16, %s43_s30, [#allocation6]  }
  0x46   :  { %s419_s19 = scalar_lea.hbm %s591_s4, 16 }
  0x47   :  { %p420_p4 = scmp.ne.s32.totalorder %s591_s4, %s419_s19  ;;  %p423_p5 = scmp.lt.u32.totalorder %s419_s19, %s591_s4 }
  0x49   :  { %p425_p6 = pnand %p423_p5, %p420_p4 }
  0x4b   :  { %428 = shalt.err (!%p425_p6)
}
  0x4c   :  { %s429_s24 = scalar_lea.vmem %s65_s7, 16  ;;  %s433_s25 = scalar_lea.vmem %s65_s7, 32 }
  0x4d   :  { %p430_p7 = scmp.ne.s32.totalorder %s65_s7, %s429_s24  ;;  %p434_p8 = scmp.lt.s32.totalorder %s65_s7, %s65_s7 }
  0x4e   :  { %p435_p9 = scmp.lt.s32.totalorder %s433_s25, %s429_s24 }
  0x50   :  { %p436_p10 = por %p435_p9, %p434_p8 }
  0x52   :  { %p437_p11 = pnand %p436_p10, %p430_p7 }
  0x54   :  { %440 = shalt.err (!%p437_p11)
}
  0x55   :  { %67 = dma.hbm_to_vmem [thread:$0]  %s591_s4, 16, %s65_s7, [#allocation9]  }
  0x56   :  { %463 = dma.done.wait [#allocation3], 128  }
  0x57   :  { %464 = vsyncadd [#allocation3], 4294967168 }
  0x58   :  { %465 = dma.done.wait [#allocation6], 528  }
  0x59   :  { %466 = vsyncadd [#allocation6], 4294966768 }
  0x5a   :  { %467 = dma.done.wait [#allocation9], 528  }
  0x5b   :  { %468 = vsyncadd [#allocation9], 4294966768  ;;  %v478_v0 = vmov 0.0|0.0   ;;  %vm479_vm0 = vmmov 0   ;;  %v480_v1 = vmov 0.0   ;;  %v84_v2 = vld [vmem:[#allocation5] sm:$0xff] }
  0x5c   :  { %308 = vmatprep.subr.bf16.mxu0 %v478_v0  ;;  %294 = vmatprep.mubr.msk.f32.mxu0 %vm479_vm0, %v480_v1  ;;  %v85_v3 = vld [vmem:[#allocation5 + $0x8] sm:$0xff]  ;;  %v86_v4 = vld [vmem:[#allocation5 + $0x10] sm:$0xff]  ;;  %v87_v6 = vld [vmem:[#allocation5 + $0x18] sm:$0xff]  ;;  %vm95_vm1 = vcmask 261120   ;;  %s481_s4 = smov [#allocation11]  }
  0x5d   :  { %314 = vmatprep.subr.bf16.mxu1 %v478_v0  ;;  %305 = vmatprep.mubr.msk.f32.mxu1 %vm479_vm0, %v480_v1  ;;  %v309_v5 = vpack.c.bf16 %v85_v3, %v84_v2  ;;  %v170_v7 = vld [vmem:[#allocation8] sm:$0xff]  ;;  %v171_v8 = vld [vmem:[#allocation8 + $0x8] sm:$0xff]  ;;  %v312_v9 = vpack.c.bf16 %v87_v6, %v86_v4  ;;  %v83_v11 = vld [vmem:[#allocation2] sm:$0xff]  ;;  %s261_s27 = sshll.u32 %s481_s4, 4  ;;  %s262_s27 = int_to_ptr.vmem [resolvable:$true] %s261_s27 }
  0x5e   :  { %v315_v10 = vpack.c.bf16 %v171_v8, %v170_v7  ;;  %v172_v12 = vld [vmem:[#allocation8 + $0x10] sm:$0xff]  ;;  %v173_v13 = vld [vmem:[#allocation8 + $0x18] sm:$0xff]  ;;  %v274_v20 = vld [vmem:[#allocation10] ss:$0 sm:$0xff]  ;;  %s441_s3 = scalar_lea.vmem %s262_s27, 128  ;;  %p446_p13 = scmp.lt.s32.totalorder %s262_s27, %s262_s27 }
  0x5f   :  { %310 = vmatpush3.bf16.msra.mxu0 %v309_v5  ;;  %v318_v14 = vpack.c.bf16 %v173_v13, %v172_v12  ;;  %v272_v15 = vld [vmem:[#allocation7] ss:$0 sm:$0xff]  ;;  %p442_p12 = scmp.ne.s32.totalorder %s262_s27, %s441_s3  ;;  %p447_p0 = scmp.lt.s32.totalorder %s441_s3, %s441_s3 }
  0x60   :  { %311 = vmatprep.subr.bf16.mxu0 %v478_v0  ;;  %316 = vmatpush3.bf16.msra.mxu1 %v315_v10 }
  0x61   :  { %317 = vmatprep.subr.bf16.mxu1 %v478_v0  ;;  %p448_p1 = por %p447_p0, %p446_p13 }
  0x63   :  { %313 = vmatpush3.bf16.msra.mxu0 %v312_v9  ;;  %p449_p2 = pnand %p448_p1, %p442_p12 }
  0x64   :  { %319 = vmatpush3.bf16.msra.mxu1 %v318_v14 }
  0x66   :  { %295 = vmatmul.mubr.msk.f32.vlgmr.msra.gmra.mrb[0].mxu0 %vm95_vm1, %v83_v11 }
 0x139   :  { %v165_v16 = vpop.f32.mrb[0].mxu0 }
 0x13a   :  { %v166_v17 = vadd.f32 %v272_v15, %v165_v16  ;;  %v296_v18 = vpop.f32.mrb[1].mxu0 }
 0x13c   :  { %v169_v19 = vmax.f32 %v166_v17, 0.0 }
 0x13e   :  { %306 = vmatmul.mubr.msk.f32.vlgmr.msra.gmra.mrb[0].mxu1 %vm95_vm1, %v169_v19 }
 0x211   :  { %v250_v21 = vpop.f32.mrb[0].mxu1 }
 0x212   :  { %v251_v22 = vadd.f32 %v274_v20, %v250_v21  ;;  %v307_v23 = vpop.f32.mrb[1].mxu1 }
 0x214   :  { %254 = vst.msk [vmem:[#allocation11] sm:$0xff] %vm95_vm1, %v251_v22 }
 0x215   :  { %452 = shalt.err (!%p449_p2)
}
 0x216   :  { %s453_s30 = scalar_lea.hbm %s592_s5, 128 }
 0x217   :  { %p454_p3 = scmp.ne.s32.totalorder %s592_s5, %s453_s30  ;;  %p457_p4 = scmp.lt.u32.totalorder %s453_s30, %s592_s5 }
 0x219   :  { %p459_p5 = pnand %p457_p4, %p454_p3 }
 0x21b   :  { %462 = shalt.err (!%p459_p5)
}
 0x21c   :  { %264 = dma.vmem_to_hbm [thread:$0]  %s262_s27, 128, %s592_s5, [#allocation4]  }
 0x21d   :  { %469 = dma.done.wait [#allocation4], 128  }
 0x21e   :  { %470 = vsyncadd [#allocation4], 4294967168 }
 0x21f   :  { %268 = vsyncpa [#allocation3], 1 }
 0x220   :  { %269 = vsyncpa [#allocation6], 1 }
 0x221   :  { %270 = vsyncpa [#allocation9], 1 }
 0x222   :  { %271 = vsyncpa [#allocation4], 1 }

</bundles_post_ra>
